<compile_context>
chip_gen: v5e
topology: v5e:2x2
jax: 0.10.0
libtpu: 0.0.40
codegen_flags: <defaults>
</compile_context>

<pallas_src>
import functools

import jax
import jax.numpy as jnp
from jax import lax
from jax.experimental import pallas as pl
from jax.experimental.pallas import tpu as pltpu

DIM = 64
NUM_HEADS = 16
DIM_PER_HEAD = DIM // NUM_HEADS
_DUMMY_IDX = 1 << 30  # padded-edge row/col sentinel: never matches any one-hot


def _round_up(x, m):
    return ((x + m - 1) // m) * m


def _vmem_capacity_bytes():
    try:
        return int(pltpu.get_tpu_info().vmem_capacity_bytes)
    except Exception:
        return 64 * 1024 * 1024  # conservative default (v7x per-core VMEM)


def _erf_f32(x):
    # Abramowitz & Stegun 7.1.26, |abs err| <= 1.5e-7: matches exact-erf GELU.
    p = 0.3275911
    a1, a2, a3, a4, a5 = (0.254829592, -0.284496736, 1.421413741,
                          -1.453152027, 1.061405429)
    s = jnp.where(x >= 0.0, 1.0, -1.0)
    z = jnp.abs(x)
    t = 1.0 / (1.0 + p * z)
    poly = ((((a5 * t + a4) * t + a3) * t + a2) * t + a1) * t
    return s * (1.0 - poly * jnp.exp(-z * z))


def _gelu_exact(x):
    return 0.5 * x * (1.0 + _erf_f32(x * 0.7071067811865476))


def _edge_kernel(
    # ---- scalar prefetch (SMEM) ----
    tile_blk_ref,     # [num_tiles_total] i32: node block of each edge tile
    tile_valid_ref,   # [num_tiles_total] i32: 1 if the tile holds (possibly) real edges
    # ---- inputs ----
    q_ref,            # [tile_n, D]     compute_dtype (node block selected by index_map)
    kv_ref,           # [N_pad, 2D]     compute_dtype, packed [v | k]
    eslab_ref,        # [tile_e, 128]   f32: [edge_feat(64) | radial | evx | evy | evz | 0]
    rc_ref,           # [tile_e, 2]     i32: [row_local, col]
    p_ref, pt_ref,    # [D, H], [H, D]  f32 per-head pool / broadcast matrices
    # ---- output ----
    out_ref,          # [n_blocks, tile_n, 4D] f32 per-core partial msum
    # ---- scratch ----
    msum_sc,          # [n_blocks, tile_n, 4D] f32 accumulator
    *, compute_dtype, precision,
):
    D = q_ref.shape[1]
    tile_n = q_ref.shape[0]
    n_pad = kv_ref.shape[0]
    tile_e = rc_ref.shape[0]

    c = pl.program_id(0)             # core-split index ("parallel")
    e = pl.program_id(1)             # edge-tile index within split ("arbitrary")
    tps = pl.num_programs(1)
    gt = c * tps + e                 # global tile index

    @pl.when(e == 0)
    def _init():
        msum_sc[...] = jnp.zeros_like(msum_sc)

    @pl.when(tile_valid_ref[gt] != 0)
    def _edge_tile():
        blk = tile_blk_ref[gt]

        rc = rc_ref[...]
        row_loc = rc[:, 0:1]                      # local row within node block
        col = rc[:, 1:2]
        slab = eslab_ref[...]
        ef = slab[:, :D]
        radial = slab[:, D:D + 1]

        # one-hot gather/scatter matrices (0/1 exact in bf16)
        iota_blk = lax.broadcasted_iota(jnp.int32, (tile_e, tile_n), 1)
        R = (row_loc == iota_blk).astype(compute_dtype)       # [tE, tile_n]
        iota_all = lax.broadcasted_iota(jnp.int32, (tile_e, n_pad), 1)
        C = (col == iota_all).astype(compute_dtype)            # [tE, N_pad]

        q_row = jnp.dot(R, q_ref[...], preferred_element_type=jnp.float32,
                        precision=precision)                   # [tE, D]
        kv_col = jnp.dot(C, kv_ref[...], preferred_element_type=jnp.float32,
                         precision=precision)                  # [tE, 2D]
        v_col = kv_col[:, :D]                                  # hot operand at lane 0
        k_col = kv_col[:, D:]

        # per-head dot product + GELU + radial, broadcast back to D lanes
        s = jnp.dot(q_row * k_col, p_ref[...],
                    preferred_element_type=jnp.float32, precision=precision)  # [tE, H]
        attn = _gelu_exact(s) * radial
        attn_full = jnp.dot(attn, pt_ref[...],
                            preferred_element_type=jnp.float32,
                            precision=precision)               # [tE, D]

        # fused 256-lane message block [m_feat | m_vec_x | m_vec_y | m_vec_z]
        mfe = v_col * ef * attn_full
        msgs = jnp.concatenate(
            [mfe,
             v_col * slab[:, D + 1:D + 2],
             v_col * slab[:, D + 2:D + 3],
             v_col * slab[:, D + 3:D + 4]], axis=1)            # [tE, 4D]

        contract_e = (((0,), (0,)), ((), ()))                  # R^T @ msgs
        delta = lax.dot_general(R, msgs.astype(compute_dtype), contract_e,
                                preferred_element_type=jnp.float32,
                                precision=precision)           # [tile_n, 4D]
        msum_sc[blk] += delta

    @pl.when(e == tps - 1)
    def _finalize():
        # Standard accumulator pattern: this core's output block is written only
        # on the last "arbitrary" step of its split.
        out_ref[...] = msum_sc[...]


def init_params(key, dim=DIM):
    ks = jax.random.split(key, 5)
    d = dim
    bound = 1.0 / (d ** 0.5)

    def lin_w(k):
        return jax.random.uniform(k, (3 * d, d), jnp.float32, -bound, bound)

    return dict(
        W_qkv=lin_w(ks[0]),
        b_qkv=jax.random.uniform(ks[1], (3 * d,), jnp.float32, -bound, bound),
        W_out=lin_w(ks[2]),
        b_out=jax.random.uniform(ks[3], (3 * d,), jnp.float32, -bound, bound),
        W_vec=lin_w(ks[4]),
        gamma=jnp.ones((d,), jnp.float32),   # torch LayerNorm default init
        beta=jnp.zeros((d,), jnp.float32),
    )


def linear_attn_forward(params, node_feat, node_vec, edge_feat, edge_vec,
                        radial, row, col, natoms, *,
                        tile_e=None, tile_n=256, num_splits=2,
                        compute_dtype=jnp.bfloat16):
    N, D = node_feat.shape
    E = row.shape[0]
    H, Dh = NUM_HEADS, DIM_PER_HEAD
    assert natoms == N and D == DIM and E > 0
    f32 = jnp.float32

    # ---------------- generation-aware tiling / budgets ----------------
    vmem_cap = _vmem_capacity_bytes()
    if tile_e is None:
        tile_e = 512 if vmem_cap >= 96 * 2**20 else 256   # v5e/v6e vs v7x
    tile_e = max(8, (int(tile_e) // 8) * 8)
    tile_e = min(tile_e, _round_up(E, 8))
    tile_n = max(8, (int(tile_n) // 8) * 8)
    tile_n = min(tile_n, _round_up(N, 8))
    num_splits = max(1, int(num_splits))

    N_pad = _round_up(N, tile_n)
    n_blocks = N_pad // tile_n

    # ---------------- node prologue (one-shot O(N*D^2), XLA) ----------------
    x = node_feat.astype(f32)
    mean = jnp.mean(x, axis=-1, keepdims=True)
    var = jnp.mean((x - mean) ** 2, axis=-1, keepdims=True)
    ln = (x - mean) * lax.rsqrt(var + 1e-5) * params["gamma"] + params["beta"]
    qkv = (ln @ params["W_qkv"].T + params["b_qkv"]).reshape(N, H, 3 * Dh)
    q = qkv[..., :Dh].reshape(N, D)                 # head-major [N, D]
    k = qkv[..., Dh:2 * Dh].reshape(N, D)
    v = qkv[..., 2 * Dh:].reshape(N, D)
    kv = jnp.concatenate([v, k], axis=1)            # [v | k]: hot operand at lane 0

    pad_n = N_pad - N
    q_p = jnp.pad(q, ((0, pad_n), (0, 0))).astype(compute_dtype)
    kv_p = jnp.pad(kv, ((0, pad_n), (0, 0))).astype(compute_dtype)

    # ------------- per-edge 128-lane slab + (row_local, col) ints -------------
    ef = edge_feat.reshape(E, D).astype(f32)        # head-major flatten
    ev = edge_vec.reshape(E, 3).astype(f32)
    rad = radial.reshape(E, 1).astype(f32)
    slab = jnp.concatenate([ef, rad, ev], axis=1)   # [E, 68]
    slab = jnp.pad(slab, ((0, 0), (0, 128 - slab.shape[1])))

    rowi = row.reshape(E).astype(jnp.int32)
    coli = col.reshape(E).astype(jnp.int32)

    # ---- bucket edges by destination (row) node block: bounds R / scatter width ----
    row_blk = rowi // tile_n
    order = jnp.argsort(row_blk)
    blk_s = row_blk[order]
    counts = jnp.bincount(row_blk, length=n_blocks).astype(jnp.int32)
    cap = ((counts + tile_e - 1) // tile_e) * tile_e
    cap_end = jnp.cumsum(cap)
    cap_start = cap_end - cap
    cnt_start = jnp.cumsum(counts) - counts
    within = jnp.arange(E, dtype=jnp.int32) - cnt_start[blk_s]
    dest = cap_start[blk_s] + within                # unique padded slot per edge

    # static padded edge capacity (each nonempty bucket wastes < tile_e slots)
    e_cap = E + min(n_blocks, E) * (tile_e - 1)
    num_tiles = -(-e_cap // tile_e)
    tiles_per_split = -(-num_tiles // num_splits)
    num_tiles_total = tiles_per_split * num_splits
    e_pad = num_tiles_total * tile_e

    slab_p = jnp.zeros((e_pad, 128), f32).at[dest].set(slab[order])
    rc_real = jnp.stack([rowi[order] - blk_s * tile_n, coli[order]], axis=1)
    rc_p = jnp.full((e_pad, 2), _DUMMY_IDX, jnp.int32).at[dest].set(rc_real)

    # per-tile node block id + validity (scalar prefetch -> SMEM)
    t_start = jnp.arange(num_tiles_total, dtype=jnp.int32) * tile_e
    total_cap = cap_end[-1]
    tile_valid = (t_start < total_cap).astype(jnp.int32)
    tile_blk = (jnp.clip(jnp.searchsorted(cap_end, t_start, side="right"),
                         0, n_blocks - 1).astype(jnp.int32) * tile_valid)

    # per-head pooling / broadcast matrices
    P = (jnp.arange(D)[:, None] // Dh == jnp.arange(H)[None, :]).astype(f32)
    PT = P.T

    # ---------------- VMEM budget ----------------
    item = jnp.dtype(compute_dtype).itemsize
    est = (2 * (2 * tile_e * 128 * 4 + tile_n * D * item)       # edge tiles + q block (2-buf)
           + 2 * N_pad * 2 * D * item                           # kv resident (2-buf)
           + 2 * N_pad * 4 * D * 4                              # per-core output slab (2-buf)
           + N_pad * 4 * D * 4                                  # msum scratch
           + tile_e * (N_pad + tile_n) * (item + 4)             # one-hots + iotas
           + tile_e * 4 * D * 4 * 4)                            # msgs / intermediates
    vmem_limit = int(min(vmem_cap * 3 // 4, max(2 * est, 32 * 1024 * 1024)))

    tps = tiles_per_split
    precision = (jax.lax.Precision.HIGHEST
                 if jnp.dtype(compute_dtype) == jnp.dtype(jnp.float32)
                 else jax.lax.Precision.DEFAULT)
    kernel = functools.partial(_edge_kernel, compute_dtype=compute_dtype,
                               precision=precision)

    in_specs = [
        pl.BlockSpec((tile_n, D), lambda c, e, blk, val: (blk[c * tps + e], 0)),
        pl.BlockSpec((N_pad, 2 * D), lambda c, e, blk, val: (0, 0)),
        pl.BlockSpec((tile_e, 128), lambda c, e, blk, val: (c * tps + e, 0)),
        pl.BlockSpec((tile_e, 2), lambda c, e, blk, val: (c * tps + e, 0)),
        pl.BlockSpec((D, H), lambda c, e, blk, val: (0, 0)),
        pl.BlockSpec((H, D), lambda c, e, blk, val: (0, 0)),
    ]
    out_spec = pl.BlockSpec((None, n_blocks, tile_n, 4 * D),
                            lambda c, e, blk, val: (c, 0, 0, 0))

    out = pl.pallas_call(
        kernel,
        out_shape=jax.ShapeDtypeStruct((num_splits, n_blocks, tile_n, 4 * D), f32),
        grid_spec=pltpu.PrefetchScalarGridSpec(
            num_scalar_prefetch=2,
            grid=(num_splits, tiles_per_split),
            in_specs=in_specs,
            out_specs=out_spec,
            scratch_shapes=[pltpu.VMEM((n_blocks, tile_n, 4 * D), f32)]),
        compiler_params=pltpu.CompilerParams(
            dimension_semantics=("parallel", "arbitrary"),
            vmem_limit_bytes=vmem_limit),
    )(tile_blk, tile_valid, q_p, kv_p, slab_p, rc_p, P, PT)

    # sum the per-core partial scatter results
    msum = out.reshape(num_splits, N_pad, 4 * D).sum(axis=0)[:N]
    m_feat = msum[:, :D]
    m_vec = msum[:, D:].reshape(N, 3, D)

    # ---------------- node epilogue (one-shot O(N*D^2), XLA) ----------------
    out_feat = m_feat @ params["W_out"].T + params["b_out"]
    o1, o2, o3 = out_feat[:, :D], out_feat[:, D:2 * D], out_feat[:, 2 * D:]
    iv = node_vec.astype(f32) @ params["W_vec"].T                 # [N, 3, 3D]
    i1, i2, i3 = iv[..., :D], iv[..., D:2 * D], iv[..., 2 * D:]
    input_dot = (i1 * i2).sum(axis=-2)
    dfeat = input_dot * o2 + o3
    dvec = i3 * o1[:, None, :] + m_vec
    return dfeat, dvec


def _reference(params, node_feat, node_vec, edge_feat, edge_vec, radial, row, col, natoms):
    """Pure-JAX f32 reference mirroring the PyTorch module."""
    D, H, Dh = DIM, NUM_HEADS, DIM_PER_HEAD
    x = node_feat
    mean = x.mean(-1, keepdims=True)
    var = ((x - mean) ** 2).mean(-1, keepdims=True)
    ln = (x - mean) / jnp.sqrt(var + 1e-5) * params["gamma"] + params["beta"]
    qkv = ln @ params["W_qkv"].T + params["b_qkv"]
    qkv = qkv.reshape(-1, H, 3 * Dh)
    q, k, v = qkv[..., :Dh], qkv[..., Dh:2 * Dh], qkv[..., 2 * Dh:]
    q_row, k_col, v_col = q[row], k[col], v[col]
    attn = jax.nn.gelu((q_row * k_col).sum(-1), approximate=False) * radial[:, None]
    input_vec = node_vec @ params["W_vec"].T
    i1, i2, i3 = input_vec[..., :D], input_vec[..., D:2 * D], input_vec[..., 2 * D:]
    input_dot = (i1 * i2).sum(-2)
    m_feat = v_col * edge_feat * attn[..., None]
    m_feat = jnp.zeros((natoms, H, Dh)).at[row].add(m_feat).reshape(natoms, D)
    m_vec = v_col[:, None, :, :] * edge_vec
    m_vec = jnp.zeros((natoms, 3, H, Dh)).at[row].add(m_vec).reshape(natoms, 3, D)
    out = m_feat @ params["W_out"].T + params["b_out"]
    o1, o2, o3 = out[:, :D], out[:, D:2 * D], out[:, 2 * D:]
    dfeat = input_dot * o2 + o3
    dvec = i3 * o1[:, None, :] + m_vec
    return dfeat, dvec


if __name__ == "__main__":
    key = jax.random.PRNGKey(0)
    kp, k1, k2, k3, k4, k5, k6, k7 = jax.random.split(key, 8)
    N, E, D, H, Dh = 8, 16, DIM, NUM_HEADS, DIM_PER_HEAD

    params = init_params(kp)
    node_feat = jax.random.normal(k1, (N, D), jnp.float32)
    node_vec = jax.random.normal(k2, (N, 3, D), jnp.float32)
    edge_feat = jax.random.normal(k3, (E, H, Dh), jnp.float32)
    edge_vec = jax.random.normal(k4, (E, 3, 1, 1), jnp.float32)
    radial = jax.random.uniform(k5, (E,), jnp.float32)
    row = jax.random.randint(k6, (E,), 0, N, jnp.int32)
    col = jax.random.randint(k7, (E,), 0, N, jnp.int32)

    rfeat, rvec = _reference(params, node_feat, node_vec, edge_feat, edge_vec,
                             radial, row, col, N)

    # Fast bf16 path: tile_e=8 -> several edge tiles per core split, exercising
    # init / accumulate / dummy-tile skip / finalize and the 2-way core split.
    dfeat, dvec = linear_attn_forward(params, node_feat, node_vec, edge_feat,
                                      edge_vec, radial, row, col, natoms=N,
                                      tile_e=8, tile_n=8, num_splits=2)
    jax.block_until_ready((dfeat, dvec))
    assert dfeat.shape == (N, D) and dvec.shape == (N, 3, D)
    assert bool(jnp.allclose(dfeat, rfeat, atol=5e-2, rtol=5e-2))
    assert bool(jnp.allclose(dvec, rvec, atol=5e-2, rtol=5e-2))

    # All-f32 compute path: tight check vs. the reference (review concern).
    dfeat32, dvec32 = linear_attn_forward(params, node_feat, node_vec, edge_feat,
                                          edge_vec, radial, row, col, natoms=N,
                                          tile_e=8, tile_n=8, num_splits=2,
                                          compute_dtype=jnp.float32)
    jax.block_until_ready((dfeat32, dvec32))
    assert bool(jnp.allclose(dfeat32, rfeat, atol=5e-3, rtol=5e-3))
    assert bool(jnp.allclose(dvec32, rvec, atol=5e-3, rtol=5e-3))

    print("KERNEL_OK")
</pallas_src>

<mosaic_0001>
module attributes {stable_mosaic.version = 11 : i64} {
  func.func @_edge_kernel(%arg0: i32, %arg1: i32, %arg2: memref<4xi32, #tpu.memory_space<smem>>, %arg3: memref<4xi32, #tpu.memory_space<smem>>, %arg4: memref<8x64xbf16, #tpu.memory_space<vmem>>, %arg5: memref<8x128xbf16, #tpu.memory_space<vmem>>, %arg6: memref<8x128xf32, #tpu.memory_space<vmem>>, %arg7: memref<8x2xi32, #tpu.memory_space<vmem>>, %arg8: memref<64x16xf32, #tpu.memory_space<vmem>>, %arg9: memref<16x64xf32, #tpu.memory_space<vmem>>, %arg10: memref<1x1x8x256xf32, #tpu.memory_space<vmem>>, %arg11: memref<1x8x256xf32, #tpu.memory_space<vmem>>) attributes {dimension_semantics = [#tpu.dimension_semantics<parallel>, #tpu.dimension_semantics<arbitrary>], iteration_bounds = array<i64: 2, 2>, scalar_prefetch = 2 : i64, scratch_operands = 1 : i64, tpu.core_type = #tpu.core_type<tc>, window_params = [{transform_indices = @transform_0, window_bounds = array<i64: 8, 64>}, {pipeline_mode = #tpu.pipeline_mode<synchronous>, transform_indices = @transform_1, window_bounds = array<i64: 8, 128>}, {transform_indices = @transform_2, window_bounds = array<i64: 8, 128>}, {transform_indices = @transform_3, window_bounds = array<i64: 8, 2>}, {pipeline_mode = #tpu.pipeline_mode<synchronous>, transform_indices = @transform_4, window_bounds = array<i64: 64, 16>}, {pipeline_mode = #tpu.pipeline_mode<synchronous>, transform_indices = @transform_5, window_bounds = array<i64: 16, 64>}, {transform_indices = @transform_6, window_bounds = array<i64: 1, 1, 8, 256>}]} {
    %c2_i32 = arith.constant 2 : i32
    %0 = arith.muli %arg0, %c2_i32 : i32
    %1 = arith.addi %0, %arg1 : i32
    %c0_i32 = arith.constant 0 : i32
    %2 = arith.cmpi eq, %arg1, %c0_i32 : i32
    %3 = arith.extui %2 : i1 to i32
    %c0_i32_0 = arith.constant 0 : i32
    %4 = arith.cmpi ne, %3, %c0_i32_0 : i32
    scf.if %4 {
      %cst = arith.constant 0.000000e+00 : f32
      %13 = vector.broadcast %cst : f32 to vector<1x8x256xf32>
      %c0 = arith.constant 0 : index
      %c0_4 = arith.constant 0 : index
      %c0_5 = arith.constant 0 : index
      %14 = vector.load %arg11[%c0, %c0_4, %c0_5] : memref<1x8x256xf32, #tpu.memory_space<vmem>>, vector<1x8x256xf32>
      tpu.vector_store %arg11[%c0, %c0_4, %c0_5], %13 {strides = array<i32>} : memref<1x8x256xf32, #tpu.memory_space<vmem>>, vector<1x8x256xf32>,
    } else {
    }
    %5 = arith.index_cast %1 : i32 to index
    %6 = memref.load %arg3[%5] : memref<4xi32, #tpu.memory_space<smem>>
    %c0_i32_1 = arith.constant 0 : i32
    %7 = arith.cmpi ne, %6, %c0_i32_1 : i32
    %8 = arith.extui %7 : i1 to i32
    %c0_i32_2 = arith.constant 0 : i32
    %9 = arith.cmpi ne, %8, %c0_i32_2 : i32
    scf.if %9 {
      %13 = arith.index_cast %1 : i32 to index
      %14 = memref.load %arg2[%13] : memref<4xi32, #tpu.memory_space<smem>>
      %c0 = arith.constant 0 : index
      %c0_4 = arith.constant 0 : index
      %15 = vector.load %arg7[%c0, %c0_4] : memref<8x2xi32, #tpu.memory_space<vmem>>, vector<8x2xi32>
      %16 = vector.extract_strided_slice %15 {offsets = [0, 0], sizes = [8, 1], strides = [1, 1]} : vector<8x2xi32> to vector<8x1xi32>
      %17 = vector.extract_strided_slice %15 {offsets = [0, 1], sizes = [8, 1], strides = [1, 1]} : vector<8x2xi32> to vector<8x1xi32>
      %c0_5 = arith.constant 0 : index
      %c0_6 = arith.constant 0 : index
      %18 = vector.load %arg6[%c0_5, %c0_6] : memref<8x128xf32, #tpu.memory_space<vmem>>, vector<8x128xf32>
      %19 = vector.extract_strided_slice %18 {offsets = [0, 0], sizes = [8, 64], strides = [1, 1]} : vector<8x128xf32> to vector<8x64xf32>
      %20 = vector.extract_strided_slice %18 {offsets = [0, 64], sizes = [8, 1], strides = [1, 1]} : vector<8x128xf32> to vector<8x1xf32>
      %21 = tpu.iota {dimensions = array<i32: 1>} : vector<8x8xi32>
      %22 = vector.broadcast %16 : vector<8x1xi32> to vector<8x8xi32>
      %23 = arith.cmpi eq, %22, %21 : vector<8x8xi32>
      %24 = arith.extui %23 : vector<8x8xi1> to vector<8x8xi32>
      %25 = arith.sitofp %24 : vector<8x8xi32> to vector<8x8xf32>
      %26 = arith.truncf %25 : vector<8x8xf32> to vector<8x8xbf16>
      %27 = tpu.iota {dimensions = array<i32: 1>} : vector<8x8xi32>
      %28 = vector.broadcast %17 : vector<8x1xi32> to vector<8x8xi32>
      %29 = arith.cmpi eq, %28, %27 : vector<8x8xi32>
      %30 = arith.extui %29 : vector<8x8xi1> to vector<8x8xi32>
      %31 = arith.sitofp %30 : vector<8x8xi32> to vector<8x8xf32>
      %32 = arith.truncf %31 : vector<8x8xf32> to vector<8x8xbf16>
      %c0_7 = arith.constant 0 : index
      %c0_8 = arith.constant 0 : index
      %33 = vector.load %arg4[%c0_7, %c0_8] : memref<8x64xbf16, #tpu.memory_space<vmem>>, vector<8x64xbf16>
      %cst = arith.constant dense<0.000000e+00> : vector<8x64xf32>
      %34 = tpu.matmul %26, %33, %cst {dimension_numbers = #tpu.dot_dimension_numbers<[1], [0], [0], [1], [0, 0, 1, 1], [], []>} : vector<8x8xbf16>, vector<8x64xbf16>, vector<8x64xf32> -> vector<8x64xf32>
      %c0_9 = arith.constant 0 : index
      %c0_10 = arith.constant 0 : index
      %35 = vector.load %arg5[%c0_9, %c0_10] : memref<8x128xbf16, #tpu.memory_space<vmem>>, vector<8x128xbf16>
      %cst_11 = arith.constant dense<0.000000e+00> : vector<8x128xf32>
      %36 = tpu.matmul %32, %35, %cst_11 {dimension_numbers = #tpu.dot_dimension_numbers<[1], [0], [0], [1], [0, 0, 1, 1], [], []>} : vector<8x8xbf16>, vector<8x128xbf16>, vector<8x128xf32> -> vector<8x128xf32>
      %37 = vector.extract_strided_slice %36 {offsets = [0, 0], sizes = [8, 64], strides = [1, 1]} : vector<8x128xf32> to vector<8x64xf32>
      %38 = vector.extract_strided_slice %36 {offsets = [0, 64], sizes = [8, 64], strides = [1, 1]} : vector<8x128xf32> to vector<8x64xf32>
      %39 = arith.mulf %34, %38 : vector<8x64xf32>
      %c0_12 = arith.constant 0 : index
      %c0_13 = arith.constant 0 : index
      %40 = vector.load %arg8[%c0_12, %c0_13] : memref<64x16xf32, #tpu.memory_space<vmem>>, vector<64x16xf32>
      %cst_14 = arith.constant dense<0.000000e+00> : vector<8x16xf32>
      %41 = tpu.matmul %39, %40, %cst_14 {dimension_numbers = #tpu.dot_dimension_numbers<[1], [0], [0], [1], [0, 0, 1, 1], [], []>} : vector<8x64xf32>, vector<64x16xf32>, vector<8x16xf32> -> vector<8x16xf32>
      %cst_15 = arith.constant 5.000000e-01 : f32
      %42 = vector.broadcast %cst_15 : f32 to vector<8x16xf32>
      %43 = arith.mulf %42, %41 : vector<8x16xf32>
      %cst_16 = arith.constant 0.707106769 : f32
      %44 = vector.broadcast %cst_16 : f32 to vector<8x16xf32>
      %45 = arith.mulf %41, %44 : vector<8x16xf32>
      %cst_17 = arith.constant 0.000000e+00 : f32
      %46 = vector.broadcast %cst_17 : f32 to vector<8x16xf32>
      %47 = arith.cmpf oge, %45, %46 : vector<8x16xf32>
      %cst_18 = arith.constant 1.000000e+00 : f32
      %cst_19 = arith.constant -1.000000e+00 : f32
      %48 = vector.broadcast %cst_18 : f32 to vector<8x16xf32>
      %49 = vector.broadcast %cst_19 : f32 to vector<8x16xf32>
      %50 = arith.select %47, %48, %49 : vector<8x16xi1>, vector<8x16xf32>
      %51 = math.absf %45 : vector<8x16xf32>
      %cst_20 = arith.constant 0.327591091 : f32
      %52 = vector.broadcast %cst_20 : f32 to vector<8x16xf32>
      %53 = arith.mulf %52, %51 : vector<8x16xf32>
      %cst_21 = arith.constant 1.000000e+00 : f32
      %54 = vector.broadcast %cst_21 : f32 to vector<8x16xf32>
      %55 = arith.addf %54, %53 : vector<8x16xf32>
      %cst_22 = arith.constant 1.000000e+00 : f32
      %56 = vector.broadcast %cst_22 : f32 to vector<8x16xf32>
      %57 = arith.divf %56, %55 : vector<8x16xf32>
      %cst_23 = arith.constant 1.06140542 : f32
      %58 = vector.broadcast %cst_23 : f32 to vector<8x16xf32>
      %59 = arith.mulf %58, %57 : vector<8x16xf32>
      %cst_24 = arith.constant -1.45315206 : f32
      %60 = vector.broadcast %cst_24 : f32 to vector<8x16xf32>
      %61 = arith.addf %59, %60 : vector<8x16xf32>
      %62 = arith.mulf %61, %57 : vector<8x16xf32>
      %cst_25 = arith.constant 1.42141378 : f32
      %63 = vector.broadcast %cst_25 : f32 to vector<8x16xf32>
      %64 = arith.addf %62, %63 : vector<8x16xf32>
      %65 = arith.mulf %64, %57 : vector<8x16xf32>
      %cst_26 = arith.constant -0.284496725 : f32
      %66 = vector.broadcast %cst_26 : f32 to vector<8x16xf32>
      %67 = arith.addf %65, %66 : vector<8x16xf32>
      %68 = arith.mulf %67, %57 : vector<8x16xf32>
      %cst_27 = arith.constant 0.254829586 : f32
      %69 = vector.broadcast %cst_27 : f32 to vector<8x16xf32>
      %70 = arith.addf %68, %69 : vector<8x16xf32>
      %71 = arith.mulf %70, %57 : vector<8x16xf32>
      %cst_28 = arith.constant 0.000000e+00 : f32
      %72 = vector.broadcast %cst_28 : f32 to vector<8x16xf32>
      %73 = arith.subf %72, %51 : vector<8x16xf32>
      %74 = arith.mulf %73, %51 : vector<8x16xf32>
      %75 = math.exp %74 : vector<8x16xf32>
      %76 = arith.mulf %71, %75 : vector<8x16xf32>
      %cst_29 = arith.constant 1.000000e+00 : f32
      %77 = vector.broadcast %cst_29 : f32 to vector<8x16xf32>
      %78 = arith.subf %77, %76 : vector<8x16xf32>
      %79 = arith.mulf %50, %78 : vector<8x16xf32>
      %cst_30 = arith.constant 1.000000e+00 : f32
      %80 = vector.broadcast %cst_30 : f32 to vector<8x16xf32>
      %81 = arith.addf %80, %79 : vector<8x16xf32>
      %82 = arith.mulf %43, %81 : vector<8x16xf32>
      %83 = vector.broadcast %20 : vector<8x1xf32> to vector<8x16xf32>
      %84 = arith.mulf %82, %83 : vector<8x16xf32>
      %c0_31 = arith.constant 0 : index
      %c0_32 = arith.constant 0 : index
      %85 = vector.load %arg9[%c0_31, %c0_32] : memref<16x64xf32, #tpu.memory_space<vmem>>, vector<16x64xf32>
      %cst_33 = arith.constant dense<0.000000e+00> : vector<8x64xf32>
      %86 = tpu.matmul %84, %85, %cst_33 {dimension_numbers = #tpu.dot_dimension_numbers<[1], [0], [0], [1], [0, 0, 1, 1], [], []>} : vector<8x16xf32>, vector<16x64xf32>, vector<8x64xf32> -> vector<8x64xf32>
      %87 = arith.mulf %37, %19 : vector<8x64xf32>
      %88 = arith.mulf %87, %86 : vector<8x64xf32>
      %89 = vector.extract_strided_slice %18 {offsets = [0, 65], sizes = [8, 1], strides = [1, 1]} : vector<8x128xf32> to vector<8x1xf32>
      %90 = vector.broadcast %89 : vector<8x1xf32> to vector<8x64xf32>
      %91 = arith.mulf %37, %90 : vector<8x64xf32>
      %92 = vector.extract_strided_slice %18 {offsets = [0, 66], sizes = [8, 1], strides = [1, 1]} : vector<8x128xf32> to vector<8x1xf32>
      %93 = vector.broadcast %92 : vector<8x1xf32> to vector<8x64xf32>
      %94 = arith.mulf %37, %93 : vector<8x64xf32>
      %95 = vector.extract_strided_slice %18 {offsets = [0, 67], sizes = [8, 1], strides = [1, 1]} : vector<8x128xf32> to vector<8x1xf32>
      %96 = vector.broadcast %95 : vector<8x1xf32> to vector<8x64xf32>
      %97 = arith.mulf %37, %96 : vector<8x64xf32>
      %98 = tpu.concatenate %88, %91, %94, %97 in 1 : vector<8x64xf32>, vector<8x64xf32>, vector<8x64xf32>, vector<8x64xf32> -> vector<8x256xf32>
      %99 = arith.truncf %98 : vector<8x256xf32> to vector<8x256xbf16>
      %cst_34 = arith.constant dense<0.000000e+00> : vector<8x256xf32>
      %100 = tpu.matmul %26, %99, %cst_34 {dimension_numbers = #tpu.dot_dimension_numbers<[0], [0], [1], [1], [0, 1, 1, 1], [], []>} : vector<8x8xbf16>, vector<8x256xbf16>, vector<8x256xf32> -> vector<8x256xf32>
      %101 = arith.index_cast %14 : i32 to index
      %c0_35 = arith.constant 0 : index
      %c0_36 = arith.constant 0 : index
      %102 = vector.load %arg11[%101, %c0_35, %c0_36] : memref<1x8x256xf32, #tpu.memory_space<vmem>>, vector<1x8x256xf32>
      %103 = vector.shape_cast %102 : vector<1x8x256xf32> to vector<8x256xf32>
      %104 = arith.addf %103, %100 : vector<8x256xf32>
      %105 = arith.index_cast %14 : i32 to index
      %c0_37 = arith.constant 0 : index
      %c0_38 = arith.constant 0 : index
      %106 = vector.load %arg11[%105, %c0_37, %c0_38] : memref<1x8x256xf32, #tpu.memory_space<vmem>>, vector<1x8x256xf32>
      %107 = vector.shape_cast %106 : vector<1x8x256xf32> to vector<8x256xf32>
      %108 = vector.shape_cast %104 : vector<8x256xf32> to vector<1x8x256xf32>
      tpu.vector_store %arg11[%105, %c0_37, %c0_38], %108 {strides = array<i32>} : memref<1x8x256xf32, #tpu.memory_space<vmem>>, vector<1x8x256xf32>,
    } else {
    }
    %c1_i32 = arith.constant 1 : i32
    %10 = arith.cmpi eq, %arg1, %c1_i32 : i32
    %11 = arith.extui %10 : i1 to i32
    %c0_i32_3 = arith.constant 0 : i32
    %12 = arith.cmpi ne, %11, %c0_i32_3 : i32
    scf.if %12 {
      %c0 = arith.constant 0 : index
      %c0_4 = arith.constant 0 : index
      %c0_5 = arith.constant 0 : index
      %13 = vector.load %arg11[%c0, %c0_4, %c0_5] : memref<1x8x256xf32, #tpu.memory_space<vmem>>, vector<1x8x256xf32>
      %c0_6 = arith.constant 0 : index
      %c0_7 = arith.constant 0 : index
      %c0_8 = arith.constant 0 : index
      %c0_9 = arith.constant 0 : index
      %14 = vector.load %arg10[%c0_6, %c0_7, %c0_8, %c0_9] : memref<1x1x8x256xf32, #tpu.memory_space<vmem>>, vector<1x1x8x256xf32>
      %15 = vector.shape_cast %14 : vector<1x1x8x256xf32> to vector<1x8x256xf32>
      %16 = vector.shape_cast %13 : vector<1x8x256xf32> to vector<1x1x8x256xf32>
      tpu.vector_store %arg10[%c0_6, %c0_7, %c0_8, %c0_9], %16 {strides = array<i32>} : memref<1x1x8x256xf32, #tpu.memory_space<vmem>>, vector<1x1x8x256xf32>,
    } else {
    }
    return
  }
  func.func @transform_0(%arg0: i32, %arg1: i32, %arg2: memref<4xi32, #tpu.memory_space<smem>>, %arg3: memref<4xi32, #tpu.memory_space<smem>>) -> (i32, i32) {
    %c2_i32 = arith.constant 2 : i32
    %0 = arith.muli %arg0, %c2_i32 : i32
    %1 = arith.addi %0, %arg1 : i32
    %2 = arith.index_cast %1 : i32 to index
    %3 = memref.load %arg2[%2] : memref<4xi32, #tpu.memory_space<smem>>
    %c0_i32 = arith.constant 0 : i32
    %c0_i32_0 = arith.constant 0 : i32
    return %3, %c0_i32 : i32, i32
  }
  func.func @transform_1(%arg0: i32, %arg1: i32, %arg2: memref<4xi32, #tpu.memory_space<smem>>, %arg3: memref<4xi32, #tpu.memory_space<smem>>) -> (i32, i32) {
    %c0_i32 = arith.constant 0 : i32
    %c0_i32_0 = arith.constant 0 : i32
    %c0_i32_1 = arith.constant 0 : i32
    return %c0_i32, %c0_i32_0 : i32, i32
  }
  func.func @transform_2(%arg0: i32, %arg1: i32, %arg2: memref<4xi32, #tpu.memory_space<smem>>, %arg3: memref<4xi32, #tpu.memory_space<smem>>) -> (i32, i32) {
    %c2_i32 = arith.constant 2 : i32
    %0 = arith.muli %arg0, %c2_i32 : i32
    %1 = arith.addi %0, %arg1 : i32
    %c0_i32 = arith.constant 0 : i32
    %c0_i32_0 = arith.constant 0 : i32
    return %1, %c0_i32 : i32, i32
  }
  func.func @transform_3(%arg0: i32, %arg1: i32, %arg2: memref<4xi32, #tpu.memory_space<smem>>, %arg3: memref<4xi32, #tpu.memory_space<smem>>) -> (i32, i32) {
    %c2_i32 = arith.constant 2 : i32
    %0 = arith.muli %arg0, %c2_i32 : i32
    %1 = arith.addi %0, %arg1 : i32
    %c0_i32 = arith.constant 0 : i32
    %c0_i32_0 = arith.constant 0 : i32
    return %1, %c0_i32 : i32, i32
  }
  func.func @transform_4(%arg0: i32, %arg1: i32, %arg2: memref<4xi32, #tpu.memory_space<smem>>, %arg3: memref<4xi32, #tpu.memory_space<smem>>) -> (i32, i32) {
    %c0_i32 = arith.constant 0 : i32
    %c0_i32_0 = arith.constant 0 : i32
    %c0_i32_1 = arith.constant 0 : i32
    return %c0_i32, %c0_i32_0 : i32, i32
  }
  func.func @transform_5(%arg0: i32, %arg1: i32, %arg2: memref<4xi32, #tpu.memory_space<smem>>, %arg3: memref<4xi32, #tpu.memory_space<smem>>) -> (i32, i32) {
    %c0_i32 = arith.constant 0 : i32
    %c0_i32_0 = arith.constant 0 : i32
    %c0_i32_1 = arith.constant 0 : i32
    return %c0_i32, %c0_i32_0 : i32, i32
  }
  func.func @transform_6(%arg0: i32, %arg1: i32, %arg2: memref<4xi32, #tpu.memory_space<smem>>, %arg3: memref<4xi32, #tpu.memory_space<smem>>) -> (i32, i32, i32, i32) {
    %c0_i32 = arith.constant 0 : i32
    %c0_i32_0 = arith.constant 0 : i32
    %c0_i32_1 = arith.constant 0 : i32
    %c0_i32_2 = arith.constant 0 : i32
    return %arg0, %c0_i32, %c0_i32_0, %c0_i32_1 : i32, i32, i32, i32
  }
}

</mosaic_0001>

<bundles_post_ra>
// kernel: tpu_custom_call.1
= control target key start
LH: loop header
LB: loop body
LE: loop exit
PB: predicated region body
PF: predicated region fallthrough
CT: control target
= control target key end

     0   :  { %s1006_s11 = smov [#allocation4]   ;;  %s1007_s12 = smov [#allocation5]   ;;  %s1268_s0 = inlined_call_operand.vmem [shape: s32[4], index: 0, kind: input, shape index: {}]   ;;  %s1269_s2 = inlined_call_operand.vmem [shape: bf16[8,64], index: 2, kind: input, shape index: {}]   ;;  %s1270_s3 = inlined_call_operand.vmem [shape: bf16[8,128], index: 3, kind: input, shape index: {}]   ;;  %s1271_s4 = inlined_call_operand.vmem [shape: f32[32,128], index: 4, kind: input, shape index: {}]   ;;  %s1272_s5 = inlined_call_operand.vmem [shape: s32[32,2], index: 5, kind: input, shape index: {}]   ;;  %s1273_s6 = inlined_call_operand.vmem [shape: f32[64,16], index: 6, kind: input, shape index: {}]   ;;  %s1274_s7 = inlined_call_operand.vmem [shape: f32[16,64], index: 7, kind: input, shape index: {}]   ;;  %s1275_s8 = inlined_call_operand.hbm [shape: f32[2,1,8,256], index: 8, kind: output, shape index: {}]   ;;  %s1276_s1 = inlined_call_operand.vmem [shape: s32[4], index: 1, kind: input, shape index: {}]  }
   0x1   :  { %s14_s29 = sshll.u32 %s1268_s0, 4  ;;  %s19_s10 = sshll.u32 %s1276_s1, 4  ;;  %s15_s29 = int_to_ptr.vmem [resolvable:$true] %s14_s29  ;;  %s20_s10 = int_to_ptr.vmem [resolvable:$true] %s19_s10 }
   0x2   :  { %17 = dma.vmem_to_smem %s15_s29, 16, %s1006_s11, [#allocation3] }
   0x3   :  { %22 = dma.vmem_to_smem %s20_s10, 16, %s1007_s12, [#allocation3] }
   0x4   :  { %968 = dma.done.wait [#allocation3], 32 }
   0x5   :  { %969 = vsyncadd [#allocation3], 4294967264 }
   0x6   :  { %25 = sfence }
   0x7   :  { %26 = vsyncpa [#allocation7], 0 }
   0x8   :  { %28 = vsyncpa [#allocation7 + $0x1], 0  ;;  %s1069_s13 = smov 0   ;;  %s1071_s14 = smov 0  }
   0x9   :  { %s1073_s0 = smov 0   ;;  %s1075_s15 = smov 0  }
   0xa   :  { %s1077_s1 = smov 0   ;;  %s1079_s16 = smov 0  }
   0xb   :  { %s1081_s17 = smov 0   ;;  %s1083_s18 = smov 0  }
   0xc LB: > { %1281 = sst [smem:[#allocation10_spill]] %s996_s16  ;;  %s751_s19 = sadd.s32 4294967295, %s1004_s18   ;;  %s1004_s18 = sphi %s1083_s18, %s34_s18   ;;  %s1000_s17 = sphi %s1081_s17, %s1293_s17   ;;  %s996_s16 = sphi %s1079_s16, %s1292_s16   ;;  %s992_s1 = sphi %s1077_s1, %s1291_s1   ;;  %s988_s15 = sphi %s1075_s15, %s1290_s15   ;;  %s984_s0 = sphi %s1073_s0, %s1296_s0   ;;  %s980_s14 = sphi %s1071_s14, %s1295_s14   ;;  %s976_s13 = sphi %s1069_s13, %s1294_s13  }
   0xd   : > { %1282 = sst [smem:[#allocation11_spill]] %s1000_s17  ;;  %s752_s20 = sadd.s32 4294967294, %s1004_s18  }
   0xe   : > { %s43_s21 = sadd.s32 1, %s996_s16  ;;  %s46_s22 = sadd.s32 1, %s1000_s17 }
   0xf   : > { %p44_p0 = scmp.ge.s32.totalorder %s43_s21, 2  ;;  %p218_p1 = scmp.ne.s32.totalorder %s984_s0, %s980_s14 }
  0x10   : > { %p219_p2 = scmp.eq.s32.totalorder %s751_s19, 3  ;;  %p224_p4 = scmp.ne.s32.totalorder %s980_s14, %s976_s13 }
  0x11   : > { %s1298_s21 = smov (%p44_p0, %s43_s21), 0  ;;  %s1300_s22 = smov (!%p44_p0, %s46_s22), %s1000_s17 }
  0x12   : > { %1283 = sst [smem:[#allocation12_spill]] %s1298_s21  ;;  %p1118_p3 = por %p219_p2, %p218_p1 }
  0x13   : > { %p48_p5 = scmp.ge.s32.totalorder %s1300_s22, 2  ;;  %p225_p6 = scmp.eq.s32.totalorder %s752_s20, 3 }
  0x14   : > { %p761_p7 = scmp.ge.s32.totalorder %s1004_s18, 1  ;;  %p287_p8 = scmp.lt.s32.totalorder %s1004_s18, 5 }
  0x15   : > { %s1302_s22 = smov (%p48_p5, %s1300_s22), 0  ;;  %p1128_p9 = por %p225_p6, %p224_p4 }
  0x16   : > { %1285 = sst [smem:[#allocation13_spill]] %s1302_s22  ;;  %p288_p10 = pnand %p761_p7, %p287_p8 }
  0x17   : > { %s205_s25 = ssub.s32 %s1000_s17, %s1302_s22  ;;  %s208_s26 = sadd.s32 1, %s984_s0 }
  0x18   : > { %p206_p11 = scmp.eq.s32.totalorder %s205_s25, 0  ;;  %291 = sbr.rel (%p288_p10) target bundleno = 913 (0x391), region = 44 }
  0x19   : > { %s1278_s28 = sand.u32 (!%p288_p10), 1, %s980_s14   ;;  %s763_s29 = sshll.u32 (!%p288_p10), %s992_s1, 1 }
  0x1a   : > { %s1136_s27 = scalar_select %p206_p11, %s984_s0, %s208_s26  }
  0x1b   : > { %s762_s30 = sshll.u32 (!%p288_p10), %s1278_s28, 4  ;;  %s1143_s9 = sadd.s32 (!%p288_p10), %s988_s15, %s763_s29 }
  0x1c   : > { %1287 = sst [smem:[#allocation14_spill]] %s1136_s27  ;;  %p343_p12 = scmp.lt.s32.totalorder (!%p288_p10), %s1143_s9, 3 }
  0x1d   : > { %s333_s10 = sld [smem:[#allocation4 + %s1143_s9]]  ;;  %s1157_s27 = scalar_lea.vmem [#allocation6], %s762_s30 }
  0x1e   : > { %s344_s11 = scalar_select %p343_p12, %s1143_s9, 3 }
  0x1f   : > { %p770_p0 = scmp.ne.s32.totalorder %s988_s15, 0 }
  0x20   : > { %s766_s12 = sshll.u32 %s344_s11, 3 }
  0x21   : > { %s346_s25 = scalar_lea.vmem %s1271_s4, %s766_s12  ;;  %s354_s21 = scalar_lea.vmem %s1272_s5, %s766_s12 }
  0x23   : > { %p334_p13 = scmp.lt.s32.totalorder %s333_s10, 0  ;;  %363 = sbr.rel (%p770_p0) target bundleno = 43 (0x2b), region = 48 }
  0x25   : > { %s1304_s10 = smov (!%p334_p13, %s333_s10), 0 }
  0x26   : > { %s764_s28 = sshll.u32 %s1304_s10, 2 }
  0x27   : > { %s337_s16 = scalar_lea.vmem %s1269_s2, %s764_s28 }
  0x28   : > { %v1008_v0 = vmov 0.0  }
  0x29   : > { %364 = vst [vmem:[#allocation2] sm:$0xff] %v1008_v0 }
  0x2a   : > { %365 = vst [vmem:[#allocation2 + $0x8] sm:$0xff] %v1008_v0 }
  0x2b PF: > { %s366_s11 = sld [smem:[#allocation5 + %s1143_s9]] }
  0x31   : > { %p771_p1 = scmp.eq.s32.totalorder %s366_s11, 0 }
  0x32   : > { %s371_s20 = sld [smem:[#allocation4 + %s1143_s9]] (!%p771_p1) }
  0x33   : > { %370 = sbr.rel (%p771_p1) target bundleno = 888 (0x378), region = 52 }
  0x38   : > { %v372_v1 = vld [vmem:[%s354_s21] sm:$0xff]  ;;  %v1009_v2 = vmov 1   ;;  %v1010_v3 = vmov 0   ;;  %vm395_vm0 = vcmask 1043456   ;;  %v1011_v7 = vmov 65   ;;  %v444_v28 = vld [vmem:[%s1273_s6 + $0x38] sm:$0xff] }
  0x39   : > { %873 = vset.pattern.permute.xlu0 %v1009_v2  ;;  %v412_v4 = vld [vmem:[%s1270_s3] sm:$0xf]  ;;  %876 = vset.pattern.permute.xlu2 %v1011_v7  ;;  %v1012_v8 = vmov 67   ;;  %v1013_v11 = vmov 66   ;;  %v374_v12 = vlaneseq  ;;  %v1014_v15 = vmov 0.0   ;;  %v443_v29 = vld [vmem:[%s1273_s6 + $0x30] sm:$0xff] }
  0x3a   : > { %384 = vperm.xlu0 %873, %v372_v1   ;;  %v417_v5 = vsel %vm395_vm0, %v412_v4, 0  ;;  %v1165_v6 = vld [vmem:[%s346_s25] sm:$0xff]  ;;  %vm391_vm2 = vcmask 64512   ;;  %v1015_v21 = vmov 64   ;;  %457 = vmatpush.msra.mxu2 %v444_v28  ;;  %v442_v31 = vld [vmem:[%s1273_s6 + $0x28] sm:$0xff]  ;;  %v440_v33 = vld [vmem:[%s1273_s6 + $0x18] sm:$0xff] }
  0x3b   : > { %426 = vmatpush.bf16.msra.mxu1 %v417_v5  ;;  %544 = vperm.xlu2 %876, %v1165_v6   ;;  %v390_v9 = vld [vmem:[%s337_s16] sm:$0xf]  ;;  %v375_v13 = vand.u32 127, %v374_v12  ;;  %s1016_s16 = smov 64   ;;  %v439_v34 = vld [vmem:[%s1273_s6 + $0x10] sm:$0xff]  ;;  %v438_v36 = vld [vmem:[%s1273_s6 + $0x8] sm:$0xff] }
  0x3c   : > { %v397_v10 = vsel %vm395_vm0, %v390_v9, 0  ;;  %875 = vset.pattern.permute.xlu1 %v1015_v21  ;;  %458 = vmatpush.msra.mxu2 %v443_v29  ;;  %v441_v32 = vld [vmem:[%s1273_s6 + $0x20] sm:$0xff]  ;;  %vm445_vm4 = vcmask 523264   ;;  %v516_v57 = vld [vmem:[%s1274_s7 + $0x8] sm:$0xff]  ;;  %vm517_vm10 = vcmask 130048   ;;  %s788_s25 = sshll.u32 %s371_s20, 4 }
  0x3d   : > { %406 = vmatpush.bf16.msra.mxu0 %v397_v10  ;;  %v437_v37 = vld [vmem:[%s1273_s6] sm:$0xff]  ;;  %535 = vmatpush.msra.mxu3 %v516_v57  ;;  %s623_s26 = scalar_lea.vmem [#allocation2], %s788_s25 }
  0x3e   : > { %459 = vmatpush.msra.mxu2 %v442_v31  ;;  %v515_v58 = vld [vmem:[%s1274_s7] sm:$0xff] }
  0x3f   : > { %536 = vmatpush.msra.mxu3 %v515_v58 }
  0x40   : > { %460 = vmatpush.msra.mxu2 %v441_v32  ;;  %v625_v32 = vld [vmem:[%s623_s26 + $0x8] sm:$0xff] }
  0x42   : > { %874 = vset.pattern.permute.xlu0 %v1010_v3  ;;  %461 = vmatpush.msra.mxu2 %v440_v33 }
  0x43   : > { %377 = vperm.xlu0 %874, %v372_v1   ;;  %877 = vset.pattern.permute.xlu2 %v1012_v8 }
  0x44   : > { %554 = vperm.xlu2 %877, %v1165_v6   ;;  %462 = vmatpush.msra.mxu2 %v439_v34 }
  0x46   : > { %463 = vmatpush.msra.mxu2 %v438_v36  ;;  %v624_v36 = vld [vmem:[%s623_s26] sm:$0xff] }
  0x48   : > { %464 = vmatpush.msra.mxu2 %v437_v37 }
  0x4b   : > { %879 = vset.pattern.permute.xlu0 %v1012_v8 }
  0x4c   : > { %878 = vset.pattern.permute.xlu2 %v1013_v11 }
  0x4d   : > { %549 = vperm.xlu2 %878, %v1165_v6  }
  0x95   : > { %v545_v22 = vpop.permute.xlu2 %544 }
  0x9e   : > { %v555_v23 = vpop.permute.xlu2 %554 }
  0xa7   : > { %v550_v38 = vpop.permute.xlu2 %549 }
  0xac   : > { %v385_v14 = vpop.permute.xlu0 %384 }
  0xad   : > { %vm386_vm1 = vcmp.eq.s32.totalorder %v385_v14, %v375_v13 }
  0xae   : > { %v773_v16 = vsel %vm386_vm1, 1.0, %v1014_v15 }
  0xaf   : > { %v389_v17 = vpack.c.bf16 %v773_v16, %v773_v16 }
  0xb1   : > { %775 = vmatmul.msk.bf16.vlgmr.msra.gmra.mxu1 %vm391_vm2, %v389_v17 }
  0xb5   : > { %v378_v18 = vpop.permute.xlu0 %377 }
  0xb6   : > { %vm379_vm3 = vcmp.eq.s32.totalorder %v378_v18, %v375_v13 }
  0xb7   : > { %v772_v19 = vsel %vm379_vm3, 1.0, %v1014_v15  ;;  %v1017_v15 = vmov -1.0  }
  0xb8   : > { %v382_v20 = vpack.c.bf16 %v772_v19, %v772_v19 }
  0xba   : > { %774 = vmatmul.msk.bf16.vlgmr.msra.gmra.mxu0 %vm391_vm2, %v382_v20 }
 0x12e   : > { %v1173_v24 = vpop.f32.mrf.mxu1 }
 0x12f   : > { %433 = vrot.lane.b32.xlu1 %v1173_v24, %s1016_s16  ;;  %v557_v25 = vmul.f32 %v555_v23, %v1173_v24  ;;  %v547_v27 = vmul.f32 %v545_v22, %v1173_v24  ;;  %v552_v41 = vmul.f32 %v550_v38, %v1173_v24 }
 0x131   : > { %563 = vrot.lane.b32.xlu0 %v557_v25, %s1016_s16 }
 0x136   : > { %v430_v26 = vpop.f32.mrf.mxu1 }
 0x137   : > { %511 = vperm.xlu1 %875, %v1165_v6   ;;  %v408_v30 = vpop.f32.mrf.mxu0  ;;  %v541_v26 = vmul.f32 %v1173_v24, %v1165_v6 }
 0x13f   : > { %559 = vrot.lane.b32.xlu1 %v547_v27, %s1016_s16  ;;  %v410_v35 = vpop.f32.mrf.mxu0 }
 0x174   : > { %570 = vxpose.xlu1.c.b16.start.end [1/1] (short) (narrow) %v382_v20, 16 }
 0x1a1   : > { %v434_v39 = vpop.permute.xlu1 %433 }
 0x1a2   : > { %v436_v40 = vmul.f32 %v434_v39, %v408_v30 }
 0x1a3   : > { %v564_v42 = vpop.permute.xlu0 %563 }
 0x1a4   : > { %v567_v43 = vsel %vm445_vm4, %v552_v41, %v564_v42  ;;  %776 = vmatmul.msk.f32.vlgmr.msra.gmra.mxu2 %vm445_vm4, %v436_v40 }
 0x1a5   : > { %v569_v44 = vpack.c.bf16 %v567_v43, %v567_v43 }
 0x1a7   : > { %v593_v45 = vsel %vm395_vm0, %v569_v44, 0 }
 0x1a8   : > { %615 = vmatpush.bf16.msrb.mxu0 %v593_v45 }
 0x1a9   : > { %v512_v21 = vpop.permute.xlu1 %511 }
 0x1b1   : > { %v560_v23 = vpop.permute.xlu1 %559 }
 0x220   : > { %v578_v25 = vpop.trf.xlu1 }
 0x221   : > { %779 = vmatmul.msk.bf16.vlgmr.msrb.gmra.mxu0 %vm391_vm2, %v578_v25 }
 0x227   : > { %v466_v46 = vpop.f32.mrf.mxu2 }
 0x228   : > { %v470_v47 = vmul.f32 0.70710677, %v466_v46  ;;  %v469_v18 = vmul.f32 0.5, %v466_v46 }
 0x22a   : > { %v473_v48 = vand.u32 2147483647, %v470_v47  ;;  %vm471_vm9 = vcmp.ge.f32.partialorder %v470_v47, 0.0 }
 0x22b   : > { %v472_v16 = vsel %vm471_vm9, 1.0, %v1017_v15 }
 0x22c   : > { %v474_v49 = vmul.f32 0.3275911, %v473_v48  ;;  %v500_v63 = vsub.f32 0.0, %v473_v48 }
 0x22e   : > { %v475_v50 = vadd.f32 1.0, %v474_v49  ;;  %v501_v2 = vmul.f32 %v500_v63, %v473_v48 }
 0x230   : > { %880 = vrcp.f32 %v475_v50  ;;  %v487_v54 = vand.u32 2147483648, %v475_v50  ;;  %v485_v56 = vand.u32 2147483647, %v475_v50  ;;  %vm481_vm6 = vweird.f32 %v475_v50 }
 0x231   : > { %v502_v5 = vmul.f32 1.442695, %v501_v2 }
 0x232   : > { %v488_v60 = vor.u32 1.1754944e-38, %v487_v54  ;;  %vm486_vm8 = vcmp.eq.f32.partialorder %v485_v56, 8.507059e+37 }
 0x233   : > { %882 = vpow2.f32 %v502_v5 }
 0x236   : > { %v881_v51 = vpop.eup %880 }
 0x237   : > { %v477_v52 = vmul.f32 %v881_v51, %v475_v50  ;;  %vm482_vm5 = vweird.f32 %v881_v51 }
 0x238   : > { %vm483_vm7 = vmor %vm481_vm6, %vm482_vm5 }
 0x239   : > { %v478_v53 = vsub.f32 1.0, %v477_v52  ;;  %v883_v12 = vpop.eup %882 }
 0x23b   : > { %v479_v55 = vmul.f32 %v881_v51, %v478_v53 }
 0x23d   : > { %v480_v59 = vadd.f32 %v881_v51, %v479_v55 }
 0x23f   : > { %v484_v61 = vsel %vm483_vm7, %v881_v51, %v480_v59 }
 0x240   : > { %v489_v62 = vsel %vm486_vm8, %v488_v60, %v484_v61 }
 0x241   : > { %v491_v0 = vmul.f32 1.0614054, %v489_v62 }
 0x243   : > { %v492_v1 = vadd.f32 -1.4531521, %v491_v0 }
 0x245   : > { %v493_v3 = vmul.f32 %v492_v1, %v489_v62 }
 0x247   : > { %v494_v4 = vadd.f32 1.4214138, %v493_v3 }
 0x249   : > { %v495_v7 = vmul.f32 %v494_v4, %v489_v62 }
 0x24b   : > { %v496_v8 = vadd.f32 -0.28449672, %v495_v7 }
 0x24d   : > { %v497_v9 = vmul.f32 %v496_v8, %v489_v62 }
 0x24f   : > { %v498_v10 = vadd.f32 0.2548296, %v497_v9 }
 0x251   : > { %v499_v11 = vmul.f32 %v498_v10, %v489_v62 }
 0x253   : > { %v504_v13 = vmul.f32 %v883_v12, %v499_v11 }
 0x255   : > { %v505_v14 = vsub.f32 1.0, %v504_v13 }
 0x257   : > { %v506_v17 = vmul.f32 %v505_v14, %v472_v16 }
 0x259   : > { %v507_v19 = vadd.f32 1.0, %v506_v17 }
 0x25b   : > { %v508_v20 = vmul.f32 %v507_v19, %v469_v18 }
 0x25d   : > { %v514_v22 = vmul.f32 %v512_v21, %v508_v20 }
 0x25f   : > { %777 = vmatmul.msk.f32.vlgmr.msra.gmra.mxu3 %vm517_vm10, %v514_v22 }
 0x29e   : > { %v617_v33 = vpop.f32.mrf.mxu0 }
 0x29f   : > { %v627_v34 = vadd.f32 %v625_v32, %v617_v33 }
 0x2a1   : > { %629 = vst [vmem:[%s623_s26 + $0x8] sm:$0xff] %v627_v34 }
 0x2a6   : > { %v619_v35 = vpop.f32.mrf.mxu0 }
 0x2e2   : > { %v538_v27 = vpop.f32.mrf.mxu3 }
 0x2e3   : > { %v542_v28 = vmul.f32 %v541_v26, %v538_v27 }
 0x2e5   : > { %v566_v29 = vsel %vm445_vm4, %v542_v28, %v560_v23 }
 0x2e6   : > { %v568_v30 = vpack.c.bf16 %v566_v29, %v566_v29 }
 0x2e8   : > { %v590_v31 = vsel %vm395_vm0, %v568_v30, 0 }
 0x2e9   : > { %602 = vmatpush.bf16.msrb.mxu3 %v590_v31 }
 0x2ec   : > { %778 = vmatmul.msk.bf16.vlgmr.msrb.gmra.mxu3 %vm391_vm2, %v578_v25 }
 0x36f   : > { %v604_v6 = vpop.f32.mrf.mxu3 }
 0x370   : > { %v626_v24 = vadd.f32 %v624_v36, %v604_v6 }
 0x372   : > { %628 = vst [vmem:[%s623_s26] sm:$0xff] %v626_v24 }
 0x377   : > { %v606_v37 = vpop.f32.mrf.mxu3 }
 0x378 PF: > { %p782_p2 = scmp.ne.s32.totalorder %s988_s15, 1 }
 0x37a   : > { %633 = sbr.rel (%p782_p2) target bundleno = 898 (0x382), region = 56 }
 0x37f   : > { %v634_v38 = vld [vmem:[#allocation2] sm:$0xff]  ;;  %v635_v39 = vld [vmem:[#allocation2 + $0x8] sm:$0xff] }
 0x380   : > { %636 = vst [vmem:[%s1157_s27] sm:$0xff] %v634_v38 }
 0x381   : > { %637 = vst [vmem:[%s1157_s27 + $0x8] sm:$0xff] %v635_v39 }
 0x382 PF: > { %s789_s9 = sshll.u32 %s992_s1, 4  ;;  %s652_s22 = sshll.u32 %s1157_s27, 4  ;;  %s653_s22 = int_to_ptr.vmem [resolvable:$true] %s652_s22 }
 0x383   : > { %s650_s17 = scalar_lea.hbm %s1275_s8, %s789_s9  ;;  %s1288_s16 = sand.u32 1, %s980_s14  }
 0x384   : > { %s654_s15 = sshll.u32 %s650_s17, 4  ;;  %s639_s21 = scalar_lea.sflag [#allocation7], %s1288_s16  ;;  %s655_s15 = int_to_ptr.hbm [resolvable:$true] %s654_s15 }
 0x385   : > { %s922_s28 = sshra.s32 %s655_s15, 4  ;;  %s928_s1 = scalar_lea.hbm %s1275_s8, 32  ;;  %s923_s28 = int_to_ptr.hbm [resolvable:$true] %s922_s28 }
 0x386   : > { %s924_s30 = scalar_lea.hbm %s923_s28, 16  ;;  %p929_p7 = scmp.lt.s32.totalorder %s923_s28, %s1275_s8 }
 0x387   : > { %p925_p4 = scmp.ne.s32.totalorder %s923_s28, %s924_s30  ;;  %p930_p8 = scmp.lt.s32.totalorder %s928_s1, %s924_s30 }
 0x389   : > { %p926_p5 = pnand %p925_p4, %p1118_p3  ;;  %p931_p10 = por %p930_p8, %p929_p7 }
 0x38b   : > { %p927_p6 = pneg %p926_p5 }
 0x38d   : > { %p932_p11 = pnand %p931_p10, %p927_p6 }
 0x38f   : > { %935 = shalt.err (!%p932_p11)
}
 0x390   : > { %790 = dma.vmem_to_hbm [thread:$0]  (%p1118_p3), %s653_s22, 256, %s655_s15, %s639_s21  }
 0x391 PF: > { %p796_p12 = scmp.ge.s32.totalorder %s1004_s18, 2  ;;  %s666_s27 = sand.u32 1, %s976_s13  }
 0x392   : > { %s667_s25 = scalar_lea.sflag [#allocation7], %s666_s27 }
 0x393   : > { %p793_p13 = pnand %p796_p12, %p1128_p9 }
 0x395   : > { %p794_p0 = pneg %p793_p13 }
 0x397   : > { %971 = dma.done.wait (%p794_p0), %s667_s25, 256  }
 0x398   : > { %973 = vsyncadd (%p794_p0), %s667_s25, 4294967040  ;;  %s34_s18 = sadd.s32 1, %s1004_s18   ;;  %s1289_s26 = sld [smem:[#allocation14_spill]] }
 0x399   : > { %p31_p1 = scmp.ge.s32.totalorder %s34_s18, 6   ;;  %s1290_s15 = sld [smem:[#allocation10_spill]] }
 0x39a   : > { %s1291_s1 = sld [smem:[#allocation11_spill]]  ;;  %s1294_s13 = smov %s980_s14 }
 0x39b   : > { %s1292_s16 = sld [smem:[#allocation12_spill]]  ;;  %s1295_s14 = smov %s984_s0 }
 0x39c   : > { %s1293_s17 = sld [smem:[#allocation13_spill]]  ;;  %33 = sbr.rel (!%p31_p1) target bundleno = 12 (0xc), region = 98 }
 0x39e   : > { %s1296_s0 = smov %s1289_s26 }
 0x3a1   :  { %673 = vsyncpa [#allocation7], 1 }
 0x3a2   :  { %675 = vsyncpa [#allocation7 + $0x1], 1 }

</bundles_post_ra>
